<compile_context>
chip_gen: v5e
topology: v5e:2x2
jax: 0.10.0
libtpu: 0.0.40
codegen_flags: <defaults>
</compile_context>

<pallas_src>
import jax
import jax.numpy as jnp
from jax.experimental import pallas as pl
from jax.experimental.pallas import tpu as pltpu


def _deconv_mm_kernel(x_ref, wt_ref, b_ref, o_ref):
    # x_ref : (Cin, tm)     bf16 input voxels, spatial dim on the 128-lane axis
    # wt_ref: (Ncols, Cin)  bf16, Ncols = Cout*s^3 rows ordered (co, a, b, c)
    # b_ref : (Ncols, 1)    f32 bias, broadcast over lanes
    # o_ref : (Ncols, tm)   bf16 lane-dense output tile
    acc = jnp.dot(wt_ref[...], x_ref[...], preferred_element_type=jnp.float32)
    acc = acc + b_ref[...]                       # bias broadcast over lanes (f32)
    o_ref[...] = jnp.maximum(acc, 0.0).astype(o_ref.dtype)


def _derive_vmem_limit():
    """Per-generation VMEM budget: 0.6 * physical capacity (safe on v5e/v6e/v7x)."""
    cap = 64 * 1024 * 1024                       # conservative fallback (v7x-sized)
    try:
        info = pltpu.get_tpu_info()
        cap_attr = getattr(info, "vmem_capacity_bytes", None)
        if cap_attr:
            cap = int(cap_attr)
    except Exception:
        pass
    return cap, int(0.6 * cap)


def upsampling_deconv_block(x, weight, bias, stride=2, *, compute_dtype=jnp.bfloat16):
    """x: (N, Cin, D, H, W); weight: (Cin, Cout, s, s, s); bias: (Cout,)."""
    N, Cin, D, H, W = x.shape
    s = int(stride)
    Cout = weight.shape[1]
    Ncols = Cout * s * s * s
    M = D * H * W
    out_dtype = x.dtype

    # ---- operand layouts (cheap / one-time; NO transpose of x) -----------
    x3 = x.reshape(N, Cin, M).astype(compute_dtype)            # free reshape
    # W^T with rows ordered (co, a, b, c); tiny tensor, done once in XLA.
    wt = jnp.transpose(weight, (1, 2, 3, 4, 0)).reshape(Ncols, Cin).astype(compute_dtype)
    b2 = jnp.broadcast_to(bias.astype(jnp.float32)[:, None],
                          (Cout, s * s * s)).reshape(Ncols, 1)

    # ---- tile selection, VMEM-budgeted per generation ---------------------
    cap, vmem_limit = _derive_vmem_limit()
    xb = jnp.dtype(compute_dtype).itemsize
    ob = jnp.dtype(compute_dtype).itemsize                     # bf16 intermediate
    per_row = 2 * Cin * xb + 2 * Ncols * ob                    # double-buffered X + out columns
    wb_bytes = 2 * (Ncols * Cin * xb + Ncols * 4)              # budget 2 copies (safe either way)
    headroom = 2 << 20
    budget = max(0, vmem_limit - wb_bytes - headroom)
    tm_cap = max(128, (budget // per_row) // 128 * 128)
    tm = int(min(2048, tm_cap))

    # megacore: keep at least 4 programs when possible so both v7x TCs get work
    while tm > 128 and N * ((M + tm - 1) // tm) < 4:
        tm = max(128, (tm // 2) // 128 * 128)

    # lane-dense output: always pad M up to a multiple of tm (tm is 128-aligned)
    Mp = ((M + tm - 1) // tm) * tm
    x3p = jnp.pad(x3, ((0, 0), (0, 0), (0, Mp - M))) if Mp != M else x3

    # large-Ncols guard: make sure the limit actually covers the chosen tile
    required = wb_bytes + per_row * tm + headroom
    if required > vmem_limit:
        vmem_limit = min(required, int(0.9 * cap))
    # TODO(synk): if Cout*s^3 is so large that even tm=128 exceeds ~0.9*VMEM, a
    # second grid axis over Ncols would be needed; not implemented here.

    grid = (N, Mp // tm)
    cost = pl.CostEstimate(
        flops=2 * N * Mp * Cin * Ncols,
        transcendentals=0,
        bytes_accessed=(N * Cin * Mp * xb + Ncols * Cin * xb + Ncols * 4
                        + N * Ncols * Mp * ob),
    )

    def _call(single_buffer_weights):
        resident = (dict(pipeline_mode=pl.Buffered(1)) if single_buffer_weights else {})
        return pl.pallas_call(
            _deconv_mm_kernel,
            out_shape=jax.ShapeDtypeStruct((N, Ncols, Mp), compute_dtype),
            grid_spec=pltpu.PrefetchScalarGridSpec(
                num_scalar_prefetch=0,
                grid=grid,
                in_specs=[
                    pl.BlockSpec((None, Cin, tm), lambda n, i: (n, 0, i)),       # X^T tile
                    pl.BlockSpec((Ncols, Cin), lambda n, i: (0, 0), **resident),  # W^T
                    pl.BlockSpec((Ncols, 1), lambda n, i: (0, 0), **resident),    # bias
                ],
                out_specs=pl.BlockSpec((None, Ncols, tm), lambda n, i: (n, 0, i)),
            ),
            compiler_params=pltpu.CompilerParams(
                dimension_semantics=("parallel", "parallel"),
                vmem_limit_bytes=int(vmem_limit),
            ),
            cost_estimate=cost,
        )(x3p, wt, b2)

    try:
        y_t = _call(True)      # weights/bias as a single resident copy
    except Exception:
        y_t = _call(False)     # fall back to default double-buffering

    # ---- pixel-shuffle scatter into the upsampled NCDHW volume -----------
    # One fused XLA pass: read bf16 intermediate, transpose, cast to out_dtype.
    y = y_t[:, :, :M] if Mp != M else y_t
    y = y.reshape(N, Cout, s, s, s, D, H, W)          # (n, co, a, b, c, d, h, w)
    y = jnp.transpose(y, (0, 1, 5, 2, 6, 3, 7, 4))    # (n, co, d, a, h, b, w, c)
    return y.reshape(N, Cout, D * s, H * s, W * s).astype(out_dtype)


def _reference(x, weight, bias, stride=2):
    # pure-JAX reference of ConvTranspose3d(k=s, stride=s, pad=0) + ReLU
    N, Cin, D, H, W = x.shape
    s = stride
    Cout = weight.shape[1]
    y = jnp.einsum('icdhw,ckabe->ikabedhw', x, weight)     # (N,Cout,s,s,s,D,H,W)
    y = y + bias[None, :, None, None, None, None, None, None]
    y = jnp.transpose(y, (0, 1, 5, 2, 6, 3, 7, 4))
    y = y.reshape(N, Cout, D * s, H * s, W * s)
    return jnp.maximum(y, 0.0)


if __name__ == "__main__":
    key = jax.random.PRNGKey(0)
    k1, k2, k3 = jax.random.split(key, 3)

    N, Cin, Cout, D, H, W, s = 2, 16, 8, 8, 8, 8, 2

    x = jax.random.normal(k1, (N, Cin, D, H, W), dtype=jnp.float32)
    # ConvTranspose3d weight shape: (in_channels, out_channels, kD, kH, kW)
    weight = 0.1 * jax.random.normal(k2, (Cin, Cout, s, s, s), dtype=jnp.float32)
    bias = 0.1 * jax.random.normal(k3, (Cout,), dtype=jnp.float32)

    out = upsampling_deconv_block(x, weight, bias, stride=s)
    out = jax.block_until_ready(out)

    ref = _reference(x, weight, bias, stride=s)
    assert out.shape == (N, Cout, D * s, H * s, W * s), out.shape
    # bf16 operands + bf16 intermediate with f32 MXU accumulation -> loosened tolerance
    max_err = float(jnp.max(jnp.abs(out - ref)))
    assert jnp.allclose(out, ref, atol=3e-2, rtol=3e-2), f"mismatch, max_err={max_err}"

    print("KERNEL_OK")
</pallas_src>

<mosaic_0001>
module attributes {stable_mosaic.version = 11 : i64} {
  func.func @_deconv_mm_kernel(%arg0: i32, %arg1: i32, %arg2: memref<1x16x256xbf16, #tpu.memory_space<vmem>>, %arg3: memref<64x16xbf16, #tpu.memory_space<vmem>>, %arg4: memref<64x1xf32, #tpu.memory_space<vmem>>, %arg5: memref<1x64x256xbf16, #tpu.memory_space<vmem>>) attributes {dimension_semantics = [#tpu.dimension_semantics<parallel>, #tpu.dimension_semantics<parallel>], iteration_bounds = array<i64: 2, 2>, scalar_prefetch = 0 : i64, scratch_operands = 0 : i64, tpu.core_type = #tpu.core_type<tc>, window_params = [{transform_indices = @transform_0, window_bounds = array<i64: 1, 16, 256>}, {pipeline_mode = #tpu.pipeline_mode<synchronous>, transform_indices = @transform_1, window_bounds = array<i64: 64, 16>}, {pipeline_mode = #tpu.pipeline_mode<synchronous>, transform_indices = @transform_2, window_bounds = array<i64: 64, 1>}, {transform_indices = @transform_3, window_bounds = array<i64: 1, 64, 256>}]} {
    %c0 = arith.constant 0 : index
    %c0_0 = arith.constant 0 : index
    %0 = vector.load %arg3[%c0, %c0_0] : memref<64x16xbf16, #tpu.memory_space<vmem>>, vector<64x16xbf16>
    %c0_1 = arith.constant 0 : index
    %c0_2 = arith.constant 0 : index
    %c0_3 = arith.constant 0 : index
    %1 = vector.load %arg2[%c0_1, %c0_2, %c0_3] : memref<1x16x256xbf16, #tpu.memory_space<vmem>>, vector<1x16x256xbf16>
    %2 = vector.shape_cast %1 : vector<1x16x256xbf16> to vector<16x256xbf16>
    %cst = arith.constant dense<0.000000e+00> : vector<64x256xf32>
    %3 = tpu.matmul %0, %2, %cst {dimension_numbers = #tpu.dot_dimension_numbers<[1], [0], [0], [1], [0, 0, 1, 1], [], []>} : vector<64x16xbf16>, vector<16x256xbf16>, vector<64x256xf32> -> vector<64x256xf32>
    %c0_4 = arith.constant 0 : index
    %c0_5 = arith.constant 0 : index
    %4 = vector.load %arg4[%c0_4, %c0_5] : memref<64x1xf32, #tpu.memory_space<vmem>>, vector<64x1xf32>
    %5 = vector.broadcast %4 : vector<64x1xf32> to vector<64x256xf32>
    %6 = arith.addf %3, %5 : vector<64x256xf32>
    %cst_6 = arith.constant 0.000000e+00 : f32
    %7 = vector.broadcast %cst_6 : f32 to vector<64x256xf32>
    %8 = arith.maximumf %6, %7 : vector<64x256xf32>
    %9 = arith.truncf %8 : vector<64x256xf32> to vector<64x256xbf16>
    %c0_7 = arith.constant 0 : index
    %c0_8 = arith.constant 0 : index
    %c0_9 = arith.constant 0 : index
    %10 = vector.load %arg5[%c0_7, %c0_8, %c0_9] : memref<1x64x256xbf16, #tpu.memory_space<vmem>>, vector<1x64x256xbf16>
    %11 = vector.shape_cast %10 : vector<1x64x256xbf16> to vector<64x256xbf16>
    %12 = vector.shape_cast %9 : vector<64x256xbf16> to vector<1x64x256xbf16>
    tpu.vector_store %arg5[%c0_7, %c0_8, %c0_9], %12 {strides = array<i32>} : memref<1x64x256xbf16, #tpu.memory_space<vmem>>, vector<1x64x256xbf16>,
    return
  }
  func.func @transform_0(%arg0: i32, %arg1: i32) -> (i32, i32, i32) {
    %c0_i32 = arith.constant 0 : i32
    %c0_i32_0 = arith.constant 0 : i32
    return %arg0, %c0_i32, %arg1 : i32, i32, i32
  }
  func.func @transform_1(%arg0: i32, %arg1: i32) -> (i32, i32) {
    %c0_i32 = arith.constant 0 : i32
    %c0_i32_0 = arith.constant 0 : i32
    %c0_i32_1 = arith.constant 0 : i32
    return %c0_i32, %c0_i32_0 : i32, i32
  }
  func.func @transform_2(%arg0: i32, %arg1: i32) -> (i32, i32) {
    %c0_i32 = arith.constant 0 : i32
    %c0_i32_0 = arith.constant 0 : i32
    %c0_i32_1 = arith.constant 0 : i32
    return %c0_i32, %c0_i32_0 : i32, i32
  }
  func.func @transform_3(%arg0: i32, %arg1: i32) -> (i32, i32, i32) {
    %c0_i32 = arith.constant 0 : i32
    %c0_i32_0 = arith.constant 0 : i32
    return %arg0, %c0_i32, %arg1 : i32, i32, i32
  }
}

module attributes {stable_mosaic.version = 11 : i64} {
  func.func @_deconv_mm_kernel(%arg0: i32, %arg1: i32, %arg2: memref<1x16x256xbf16, #tpu.memory_space<vmem>>, %arg3: memref<64x16xbf16, #tpu.memory_space<vmem>>, %arg4: memref<64x1xf32, #tpu.memory_space<vmem>>, %arg5: memref<1x64x256xbf16, #tpu.memory_space<vmem>>) attributes {dimension_semantics = [#tpu.dimension_semantics<parallel>, #tpu.dimension_semantics<parallel>], iteration_bounds = array<i64: 2, 2>, scalar_prefetch = 0 : i64, scratch_operands = 0 : i64, tpu.core_type = #tpu.core_type<tc>, window_params = [{transform_indices = @transform_0, window_bounds = array<i64: 1, 16, 256>}, {pipeline_mode = #tpu.pipeline_mode<synchronous>, transform_indices = @transform_1, window_bounds = array<i64: 64, 16>}, {pipeline_mode = #tpu.pipeline_mode<synchronous>, transform_indices = @transform_2, window_bounds = array<i64: 64, 1>}, {transform_indices = @transform_3, window_bounds = array<i64: 1, 64, 256>}]} {
    %c0 = arith.constant 0 : index
    %c0_0 = arith.constant 0 : index
    %0 = vector.load %arg3[%c0, %c0_0] : memref<64x16xbf16, #tpu.memory_space<vmem>>, vector<64x16xbf16>
    %c0_1 = arith.constant 0 : index
    %c0_2 = arith.constant 0 : index
    %c0_3 = arith.constant 0 : index
    %1 = vector.load %arg2[%c0_1, %c0_2, %c0_3] : memref<1x16x256xbf16, #tpu.memory_space<vmem>>, vector<1x16x256xbf16>
    %2 = vector.shape_cast %1 : vector<1x16x256xbf16> to vector<16x256xbf16>
    %cst = arith.constant dense<0.000000e+00> : vector<64x256xf32>
    %3 = tpu.matmul %0, %2, %cst {dimension_numbers = #tpu.dot_dimension_numbers<[1], [0], [0], [1], [0, 0, 1, 1], [], []>} : vector<64x16xbf16>, vector<16x256xbf16>, vector<64x256xf32> -> vector<64x256xf32>
    %c0_4 = arith.constant 0 : index
    %c0_5 = arith.constant 0 : index
    %4 = vector.load %arg4[%c0_4, %c0_5] : memref<64x1xf32, #tpu.memory_space<vmem>>, vector<64x1xf32>
    %5 = vector.broadcast %4 : vector<64x1xf32> to vector<64x256xf32>
    %6 = arith.addf %3, %5 : vector<64x256xf32>
    %cst_6 = arith.constant 0.000000e+00 : f32
    %7 = vector.broadcast %cst_6 : f32 to vector<64x256xf32>
    %8 = arith.maximumf %6, %7 : vector<64x256xf32>
    %9 = arith.truncf %8 : vector<64x256xf32> to vector<64x256xbf16>
    %c0_7 = arith.constant 0 : index
    %c0_8 = arith.constant 0 : index
    %c0_9 = arith.constant 0 : index
    %10 = vector.load %arg5[%c0_7, %c0_8, %c0_9] : memref<1x64x256xbf16, #tpu.memory_space<vmem>>, vector<1x64x256xbf16>
    %11 = vector.shape_cast %10 : vector<1x64x256xbf16> to vector<64x256xbf16>
    %12 = vector.shape_cast %9 : vector<64x256xbf16> to vector<1x64x256xbf16>
    tpu.vector_store %arg5[%c0_7, %c0_8, %c0_9], %12 {strides = array<i32>} : memref<1x64x256xbf16, #tpu.memory_space<vmem>>, vector<1x64x256xbf16>,
    return
  }
  func.func @transform_0(%arg0: i32, %arg1: i32) -> (i32, i32, i32) {
    %c0_i32 = arith.constant 0 : i32
    %c0_i32_0 = arith.constant 0 : i32
    return %arg0, %c0_i32, %arg1 : i32, i32, i32
  }
  func.func @transform_1(%arg0: i32, %arg1: i32) -> (i32, i32) {
    %c0_i32 = arith.constant 0 : i32
    %c0_i32_0 = arith.constant 0 : i32
    %c0_i32_1 = arith.constant 0 : i32
    return %c0_i32, %c0_i32_0 : i32, i32
  }
  func.func @transform_2(%arg0: i32, %arg1: i32) -> (i32, i32) {
    %c0_i32 = arith.constant 0 : i32
    %c0_i32_0 = arith.constant 0 : i32
    %c0_i32_1 = arith.constant 0 : i32
    return %c0_i32, %c0_i32_0 : i32, i32
  }
  func.func @transform_3(%arg0: i32, %arg1: i32) -> (i32, i32, i32) {
    %c0_i32 = arith.constant 0 : i32
    %c0_i32_0 = arith.constant 0 : i32
    return %arg0, %c0_i32, %arg1 : i32, i32, i32
  }
}

</mosaic_0001>

<bundles_post_ra>
// kernel: tpu_custom_call.1
= control target key start
LH: loop header
LB: loop body
LE: loop exit
PB: predicated region body
PF: predicated region fallthrough
CT: control target
= control target key end

     0   :  { %8 = vsyncpa [#allocation4], 0  ;;  %s968_s0 = inlined_call_operand.vmem [shape: bf16[2,16,512], index: 0, kind: input, shape index: {}]   ;;  %s969_s1 = inlined_call_operand.vmem [shape: bf16[64,16], index: 1, kind: input, shape index: {}]   ;;  %s970_s2 = inlined_call_operand.vmem [shape: f32[64,1], index: 2, kind: input, shape index: {}]   ;;  %s971_s3 = inlined_call_operand.hbm [shape: bf16[2,64,512], index: 3, kind: output, shape index: {}]  }
   0x1   :  { %10 = vsyncpa [#allocation4 + $0x1], 0  ;;  %s779_s12 = smov 0   ;;  %s781_s13 = smov 0  }
   0x2   :  { %s783_s14 = smov 0   ;;  %s785_s15 = smov 0  }
   0x3   :  { %s787_s16 = smov 0   ;;  %s789_s17 = smov 0  }
   0x4   :  { %s791_s18 = smov 0   ;;  %s793_s19 = smov 0  }
   0x5 LB: > { %s524_s20 = sadd.s32 4294967295, %s753_s19   ;;  %s525_s21 = sadd.s32 4294967294, %s753_s19   ;;  %s753_s19 = sphi %s793_s19, %s16_s19   ;;  %s749_s18 = sphi %s791_s18, %s981_s18   ;;  %s745_s17 = sphi %s789_s17, %s980_s17   ;;  %s741_s16 = sphi %s787_s16, %s979_s16   ;;  %s737_s15 = sphi %s785_s15, %s978_s15   ;;  %s733_s14 = sphi %s783_s14, %s977_s14   ;;  %s729_s13 = sphi %s781_s13, %s976_s13   ;;  %s725_s12 = sphi %s779_s12, %s975_s12  }
   0x6   : > { %s25_s22 = sadd.s32 1, %s745_s17  ;;  %s28_s23 = sadd.s32 1, %s749_s18 }
   0x7   : > { %p26_p0 = scmp.ge.s32.totalorder %s25_s22, 2  ;;  %p44_p1 = scmp.ne.s32.totalorder %s733_s14, %s729_s13 }
   0x8   : > { %p45_p2 = scmp.eq.s32.totalorder %s753_s19, 0  ;;  %p118_p5 = scmp.eq.s32.totalorder %s524_s20, 3 }
   0x9   : > { %s983_s22 = smov (%p26_p0, %s25_s22), 0  ;;  %s985_s23 = smov (!%p26_p0, %s28_s23), %s749_s18 }
   0xa   : > { %s33_s24 = ssub.s32 %s745_s17, %s983_s22  ;;  %p831_p3 = por %p45_p2, %p44_p1 }
   0xb   : > { %p30_p4 = scmp.ge.s32.totalorder %s985_s23, 2  ;;  %p123_p6 = scmp.ne.s32.totalorder %s729_s13, %s725_s12 }
   0xc   : > { %p124_p7 = scmp.eq.s32.totalorder %s525_s21, 3  ;;  %p839_p8 = por %p118_p5, %p44_p1 }
   0xd   : > { %s987_s23 = smov (%p30_p4, %s985_s23), 0  ;;  %s37_s30 = sadd.s32 1, %s733_s14 }
   0xe   : > { %p843_p9 = por %p124_p7, %p123_p6  ;;  %s32_s28 = ssub.s32 %s749_s18, %s987_s23 }
   0xf   : > { %s34_s29 = sor.u32 %s33_s24, %s32_s28  ;;  %p527_p11 = scmp.ge.s32.totalorder %s753_s19, 4 }
  0x10   : > { %p35_p10 = scmp.eq.s32.totalorder %s34_s29, 0 }
  0x11   : > { %146 = sbr.rel (%p527_p11) target bundleno = 31 (0x1f), region = 24 }
  0x12   : > { %s851_s4 = scalar_select %p35_p10, %s733_s14, %s37_s30  }
  0x16   : > { %149 = sbr.rel (!%p831_p3) target bundleno = 31 (0x1f), region = 28  ;;  %s151_s5 = sand.u32 (%p831_p3), 1, %s733_s14  }
  0x17   : > { %s529_s6 = sshll.u32 (%p831_p3), %s745_s17, 1  ;;  %s528_s7 = sshll.u32 (%p831_p3), %s151_s5, 4 }
  0x18   : > { %s530_s8 = sshll.u32 (%p831_p3), %s749_s18, 3  ;;  %s153_s24 = scalar_lea.vmem (%p831_p3), [#allocation2], %s528_s7 }
  0x19   : > { %s156_s9 = sadd.s32 (%p831_p3), %s530_s8, %s529_s6 }
  0x1a   : > { %s531_s10 = sshll.u32 (%p831_p3), %s156_s9, 2 }
  0x1b   : > { %s158_s21 = scalar_lea.vmem %s968_s0, %s531_s10 }
  0x1c   : > { %v189_v0 = vld [vmem:[%s158_s21] sm:$0xff]  ;;  %v191_v1 = vld [vmem:[%s158_s21 + $0x10] sm:$0xff] }
  0x1d   : > { %190 = vst [vmem:[%s153_s24] sm:$0xff] %v189_v0 }
  0x1e   : > { %192 = vst [vmem:[%s153_s24 + $0x8] sm:$0xff] %v191_v1 }
  0x1f PF: > { %p532_p12 = scmp.ge.s32.totalorder %s753_s19, 1  ;;  %p197_p13 = scmp.lt.s32.totalorder %s753_s19, 5 }
  0x21   : > { %p198_p0 = pnand %p532_p12, %p197_p13 }
  0x22   : > { %s865_s25 = sand.u32 (!%p198_p0), 1, %s729_s13   ;;  %s569_s5 = sshll.u32 (!%p198_p0), %s741_s16, 5 }
  0x23   : > { %201 = sbr.rel (%p198_p0) target bundleno = 215 (0xd7), region = 66  ;;  %s533_s30 = sshll.u32 (!%p198_p0), %s865_s25, 4 }
  0x24   : > { %s206_s7 = scalar_lea.vmem (!%p198_p0), [#allocation2], %s533_s30  ;;  %s534_s28 = sshll.u32 (!%p198_p0), %s865_s25, 6 }
  0x25   : > { %s913_s29 = scalar_lea.vmem (!%p198_p0), [#allocation3], %s534_s28  ;;  %s568_s30 = sshll.u32 (!%p198_p0), %s737_s15, 1 }
  0x26   : > { %s433_s6 = sadd.s32 (!%p198_p0), %s569_s5, %s568_s30  ;;  %s436_s9 = sshll.u32 (!%p198_p0), %s913_s29, 4  ;;  %s437_s9 = int_to_ptr.vmem [resolvable:$true] %s436_s9 }
  0x27   : > { %s570_s15 = sshll.u32 (!%p198_p0), %s433_s6, 2  ;;  %s422_s11 = scalar_lea.sflag (!%p198_p0), [#allocation4], %s865_s25 }
  0x28   : > { %v242_v2 = vld [vmem:[%s970_s2 + $0x10] sm:$0xff]  ;;  %v755_v3 = vmov 0   ;;  %v240_v4 = vld [vmem:[%s970_s2] sm:$0xff]  ;;  %v578_v6 = vld [vmem:[%s206_s7 + $0x4] sm:$0xf0]  ;;  %vm318_vm0 = vcmask 130048   ;;  %s435_s8 = scalar_lea.hbm %s971_s3, %s570_s15 }
  0x29   : > { %657 = vset.pattern.permute.xlu1 %v755_v3  ;;  %656 = vset.pattern.permute.xlu0 %v755_v3  ;;  %v553_v5 = vld [vmem:[%s206_s7] sm:$0xf]  ;;  %v577_v8 = vld [vmem:[%s206_s7 + $0x4] sm:$0xf]  ;;  %v555_v9 = vld [vmem:[%s206_s7 + $0x8] sm:$0xf0] }
  0x2a   : > { %260 = vperm.xlu1 %657, %v242_v2   ;;  %250 = vperm.xlu0 %656, %v240_v4   ;;  %v554_v7 = vor.u32 %v578_v6, %v553_v5  ;;  %v558_v10 = vor.u32 %v577_v8, %v555_v9  ;;  %v573_v11 = vld [vmem:[%s969_s1] sm:$0xff]  ;;  %v575_v12 = vld [vmem:[%s969_s1 + $0x10] sm:$0xff]  ;;  %v243_v14 = vld [vmem:[%s970_s2 + $0x18] sm:$0xff]  ;;  %s438_s10 = sshll.u32 %s435_s8, 4  ;;  %s679_s30 = scalar_lea.hbm %s971_s3, 256  ;;  %s439_s10 = int_to_ptr.hbm [resolvable:$true] %s438_s10 }
  0x2b   : > { %658 = vset.pattern.permute.xlu2 %v755_v3  ;;  %v244_v13 = vld [vmem:[%s970_s2 + $0x20] sm:$0xff]  ;;  %v241_v15 = vld [vmem:[%s970_s2 + $0x8] sm:$0xff]  ;;  %v247_v17 = vld [vmem:[%s970_s2 + $0x38] sm:$0xff]  ;;  %s673_s20 = sshra.s32 %s439_s10, 4  ;;  %s674_s20 = int_to_ptr.hbm [resolvable:$true] %s673_s20 }
  0x2c   : > { %338 = vmatpush.bf16.msra.mxu0 %v554_v7  ;;  %579 = vmatpush.bf16.msra.mxu2 %v554_v7  ;;  %v245_v16 = vld [vmem:[%s970_s2 + $0x28] sm:$0xff]  ;;  %v246_v18 = vld [vmem:[%s970_s2 + $0x30] sm:$0xff]  ;;  %v576_v20 = vld [vmem:[%s969_s1 + $0x18] sm:$0xff]  ;;  %s675_s21 = scalar_lea.hbm %s674_s20, 64  ;;  %p680_p4 = scmp.lt.s32.totalorder %s674_s20, %s971_s3 }
  0x2d   : > { %367 = vmatpush.bf16.msra.mxu1 %v558_v10  ;;  %580 = vmatpush.bf16.msra.mxu3 %v558_v10  ;;  %v574_v19 = vld [vmem:[%s969_s1 + $0x8] sm:$0xff]  ;;  %p676_p1 = scmp.ne.s32.totalorder %s674_s20, %s675_s21  ;;  %p681_p5 = scmp.lt.s32.totalorder %s679_s30, %s675_s21 }
  0x2e   : > { %270 = vperm.xlu2 %658, %v244_v13  }
  0x2f   : > { %559 = vmatmul.msk.bf16.vlgmr.msra.gmra.mxu0 %vm318_vm0, %v573_v11  ;;  %561 = vmatmul.msk.bf16.vlgmr.msra.gmra.mxu2 %vm318_vm0, %v575_v12  ;;  %p677_p2 = pnand %p676_p1, %p839_p8  ;;  %p682_p6 = por %p681_p5, %p680_p4 }
  0x30   : > { %563 = vmatmul.msk.bf16.vlgmr.msra.gmra.mxu1 %vm318_vm0, %v573_v11  ;;  %565 = vmatmul.msk.bf16.vlgmr.msra.gmra.mxu3 %vm318_vm0, %v575_v12 }
  0x31   : > { %p678_p3 = pneg %p677_p2 }
  0x32   : > { %265 = vperm.xlu1 %657, %v243_v14   ;;  %255 = vperm.xlu0 %656, %v241_v15  }
  0x33   : > { %p683_p7 = pnand %p682_p6, %p678_p3 }
  0x36   : > { %275 = vperm.xlu2 %658, %v245_v16  }
  0x3a   : > { %285 = vperm.xlu1 %657, %v247_v17   ;;  %280 = vperm.xlu0 %656, %v246_v18  }
  0x3f   : > { %560 = vmatmul.msk.bf16.gmra.mxu0 %vm318_vm0, %v574_v19  ;;  %562 = vmatmul.msk.bf16.gmra.mxu2 %vm318_vm0, %v576_v20 }
  0x40   : > { %564 = vmatmul.msk.bf16.gmra.mxu1 %vm318_vm0, %v574_v19  ;;  %566 = vmatmul.msk.bf16.gmra.mxu3 %vm318_vm0, %v576_v20 }
  0x88   : > { %v271_v26 = vpop.permute.xlu2 %270 }
  0x90   : > { %v276_v45 = vpop.permute.xlu2 %275 }
  0x9c   : > { %v251_v21 = vpop.permute.xlu0 %250  ;;  %v261_v39 = vpop.permute.xlu1 %260 }
  0xa4   : > { %v256_v33 = vpop.permute.xlu0 %255  ;;  %v266_v58 = vpop.permute.xlu1 %265 }
  0xac   : > { %v340_v22 = vpop.f32.mrf.mxu0  ;;  %v281_v61 = vpop.permute.xlu0 %280 }
  0xad   : > { %v341_v23 = vadd.f32 %v340_v22, %v251_v21  ;;  %v369_v24 = vpop.f32.mrf.mxu1  ;;  %v286_v12 = vpop.permute.xlu1 %285 }
  0xae   : > { %v370_v25 = vadd.f32 %v369_v24, %v251_v21 }
  0xaf   : > { %v389_v27 = vmax.f32 %v341_v23, 0.0 }
  0xb0   : > { %v390_v28 = vmax.f32 %v370_v25, 0.0 }
  0xb2   : > { %v405_v29 = vpack.c.bf16 %v390_v28, %v389_v27  ;;  %v350_v30 = vpop.f32.mrf.mxu2 }
  0xb3   : > { %v351_v31 = vadd.f32 %v350_v30, %v271_v26  ;;  %v379_v32 = vpop.f32.mrf.mxu3 }
  0xb4   : > { %413 = vst [vmem:[%s913_s29] sm:$0xff] %v405_v29  ;;  %v380_v34 = vadd.f32 %v379_v32, %v271_v26  ;;  %v342_v35 = vpop.f32.mrf.mxu0 }
  0xb5   : > { %v397_v36 = vmax.f32 %v351_v31, 0.0  ;;  %v343_v37 = vadd.f32 %v342_v35, %v256_v33  ;;  %v371_v38 = vpop.f32.mrf.mxu1 }
  0xb6   : > { %v398_v40 = vmax.f32 %v380_v34, 0.0  ;;  %v372_v41 = vadd.f32 %v371_v38, %v256_v33 }
  0xb7   : > { %v391_v42 = vmax.f32 %v343_v37, 0.0 }
  0xb8   : > { %v409_v43 = vpack.c.bf16 %v398_v40, %v397_v36  ;;  %v392_v44 = vmax.f32 %v372_v41, 0.0 }
  0xba   : > { %417 = vst [vmem:[%s913_s29 + $0x20] sm:$0xff] %v409_v43  ;;  %v406_v46 = vpack.c.bf16 %v392_v44, %v391_v42  ;;  %v352_v47 = vpop.f32.mrf.mxu2 }
  0xbb   : > { %v353_v48 = vadd.f32 %v352_v47, %v276_v45  ;;  %v381_v49 = vpop.f32.mrf.mxu3 }
  0xbc   : > { %414 = vst [vmem:[%s913_s29 + $0x8] sm:$0xff] %v406_v46  ;;  %v382_v50 = vadd.f32 %v381_v49, %v276_v45  ;;  %v345_v51 = vpop.f32.mrf.mxu0 }
  0xbd   : > { %v399_v52 = vmax.f32 %v353_v48, 0.0  ;;  %v346_v53 = vadd.f32 %v345_v51, %v261_v39  ;;  %v374_v54 = vpop.f32.mrf.mxu1 }
  0xbe   : > { %v400_v55 = vmax.f32 %v382_v50, 0.0  ;;  %v375_v56 = vadd.f32 %v374_v54, %v261_v39 }
  0xbf   : > { %v393_v57 = vmax.f32 %v346_v53, 0.0 }
  0xc0   : > { %v410_v59 = vpack.c.bf16 %v400_v55, %v399_v52  ;;  %v394_v60 = vmax.f32 %v375_v56, 0.0 }
  0xc2   : > { %418 = vst [vmem:[%s913_s29 + $0x28] sm:$0xff] %v410_v59  ;;  %v407_v62 = vpack.c.bf16 %v394_v60, %v393_v57  ;;  %v355_v63 = vpop.f32.mrf.mxu2 }
  0xc3   : > { %v356_v0 = vadd.f32 %v355_v63, %v281_v61  ;;  %v384_v1 = vpop.f32.mrf.mxu3 }
  0xc4   : > { %415 = vst [vmem:[%s913_s29 + $0x10] sm:$0xff] %v407_v62  ;;  %v385_v2 = vadd.f32 %v384_v1, %v281_v61  ;;  %v347_v3 = vpop.f32.mrf.mxu0 }
  0xc5   : > { %v401_v4 = vmax.f32 %v356_v0, 0.0  ;;  %v348_v5 = vadd.f32 %v347_v3, %v266_v58  ;;  %v376_v6 = vpop.f32.mrf.mxu1 }
  0xc6   : > { %v402_v7 = vmax.f32 %v385_v2, 0.0  ;;  %v377_v8 = vadd.f32 %v376_v6, %v266_v58 }
  0xc7   : > { %v395_v9 = vmax.f32 %v348_v5, 0.0 }
  0xc8   : > { %v411_v10 = vpack.c.bf16 %v402_v7, %v401_v4  ;;  %v396_v11 = vmax.f32 %v377_v8, 0.0 }
  0xca   : > { %419 = vst [vmem:[%s913_s29 + $0x30] sm:$0xff] %v411_v10  ;;  %v408_v13 = vpack.c.bf16 %v396_v11, %v395_v9  ;;  %v357_v14 = vpop.f32.mrf.mxu2 }
  0xcb   : > { %v358_v15 = vadd.f32 %v357_v14, %v286_v12  ;;  %v386_v16 = vpop.f32.mrf.mxu3 }
  0xcc   : > { %416 = vst [vmem:[%s913_s29 + $0x18] sm:$0xff] %v408_v13  ;;  %v387_v17 = vadd.f32 %v386_v16, %v286_v12 }
  0xcd   : > { %v403_v18 = vmax.f32 %v358_v15, 0.0 }
  0xce   : > { %v404_v19 = vmax.f32 %v387_v17, 0.0 }
  0xd0   : > { %v412_v20 = vpack.c.bf16 %v404_v19, %v403_v18 }
  0xd2   : > { %420 = vst [vmem:[%s913_s29 + $0x38] sm:$0xff] %v412_v20 }
  0xd3   : > { %686 = shalt.err (!%p683_p7)
}
  0xd4   : > { %s756_s25 = smov 128   ;;  %s757_s29 = smov 256  }
  0xd5   : > { %s758_s15 = smov 8  }
  0xd6   : > { %581 = dma.vmem_to_hbm [thread:$0]  (%p839_p8), %s437_s9, 1024, %s439_s10, %s422_s11, %s756_s25, %s757_s29, %s758_s15  }
  0xd7 PF: > { %p587_p10 = scmp.ge.s32.totalorder %s753_s19, 2  ;;  %s453_s16 = sand.u32 1, %s725_s12  }
  0xd8   : > { %s454_s7 = scalar_lea.sflag [#allocation4], %s453_s16 }
  0xd9   : > { %p584_p11 = pnand %p587_p10, %p843_p9 }
  0xdb   : > { %p585_p12 = pneg %p584_p11 }
  0xdd   : > { %720 = dma.done.wait (%p585_p12), %s454_s7, 1024  }
  0xde   : > { %722 = vsyncadd (%p585_p12), %s454_s7, 4294966272  ;;  %s16_s19 = sadd.s32 1, %s753_s19   ;;  %s975_s12 = smov %s729_s13 }
  0xdf   : > { %p13_p13 = scmp.ge.s32.totalorder %s16_s19, 6   ;;  %s976_s13 = smov %s733_s14 }
  0xe0   : > { %s977_s14 = smov %s851_s4  ;;  %s978_s15 = smov %s745_s17 }
  0xe1   : > { %s979_s16 = smov %s749_s18  ;;  %s980_s17 = smov %s983_s22 }
  0xe2   : > { %s981_s18 = smov %s987_s23  ;;  %15 = sbr.rel (!%p13_p13) target bundleno = 5 (0x5), region = 110 }
  0xe7   :  { %460 = vsyncpa [#allocation4], 1 }
  0xe8   :  { %462 = vsyncpa [#allocation4 + $0x1], 1 }

// kernel: tpu_custom_call.1
= control target key start
LH: loop header
LB: loop body
LE: loop exit
PB: predicated region body
PF: predicated region fallthrough
CT: control target
= control target key end

     0   :  { %8 = vsyncpa [#allocation4], 0  ;;  %s968_s0 = inlined_call_operand.vmem [shape: bf16[2,16,512], index: 0, kind: input, shape index: {}]   ;;  %s969_s1 = inlined_call_operand.vmem [shape: bf16[64,16], index: 1, kind: input, shape index: {}]   ;;  %s970_s2 = inlined_call_operand.vmem [shape: f32[64,1], index: 2, kind: input, shape index: {}]   ;;  %s971_s3 = inlined_call_operand.hbm [shape: bf16[2,64,512], index: 3, kind: output, shape index: {}]  }
   0x1   :  { %10 = vsyncpa [#allocation4 + $0x1], 0  ;;  %s779_s12 = smov 0   ;;  %s781_s13 = smov 0  }
   0x2   :  { %s783_s14 = smov 0   ;;  %s785_s15 = smov 0  }
   0x3   :  { %s787_s16 = smov 0   ;;  %s789_s17 = smov 0  }
   0x4   :  { %s791_s18 = smov 0   ;;  %s793_s19 = smov 0  }
   0x5 LB: > { %s524_s20 = sadd.s32 4294967295, %s753_s19   ;;  %s525_s21 = sadd.s32 4294967294, %s753_s19   ;;  %s753_s19 = sphi %s793_s19, %s16_s19   ;;  %s749_s18 = sphi %s791_s18, %s981_s18   ;;  %s745_s17 = sphi %s789_s17, %s980_s17   ;;  %s741_s16 = sphi %s787_s16, %s979_s16   ;;  %s737_s15 = sphi %s785_s15, %s978_s15   ;;  %s733_s14 = sphi %s783_s14, %s977_s14   ;;  %s729_s13 = sphi %s781_s13, %s976_s13   ;;  %s725_s12 = sphi %s779_s12, %s975_s12  }
   0x6   : > { %s25_s22 = sadd.s32 1, %s745_s17  ;;  %s28_s23 = sadd.s32 1, %s749_s18 }
   0x7   : > { %p26_p0 = scmp.ge.s32.totalorder %s25_s22, 2  ;;  %p44_p1 = scmp.ne.s32.totalorder %s733_s14, %s729_s13 }
   0x8   : > { %p45_p2 = scmp.eq.s32.totalorder %s753_s19, 0  ;;  %p118_p5 = scmp.eq.s32.totalorder %s524_s20, 3 }
   0x9   : > { %s983_s22 = smov (%p26_p0, %s25_s22), 0  ;;  %s985_s23 = smov (!%p26_p0, %s28_s23), %s749_s18 }
   0xa   : > { %s33_s24 = ssub.s32 %s745_s17, %s983_s22  ;;  %p831_p3 = por %p45_p2, %p44_p1 }
   0xb   : > { %p30_p4 = scmp.ge.s32.totalorder %s985_s23, 2  ;;  %p123_p6 = scmp.ne.s32.totalorder %s729_s13, %s725_s12 }
   0xc   : > { %p124_p7 = scmp.eq.s32.totalorder %s525_s21, 3  ;;  %p839_p8 = por %p118_p5, %p44_p1 }
   0xd   : > { %s987_s23 = smov (%p30_p4, %s985_s23), 0  ;;  %s37_s30 = sadd.s32 1, %s733_s14 }
   0xe   : > { %p843_p9 = por %p124_p7, %p123_p6  ;;  %s32_s28 = ssub.s32 %s749_s18, %s987_s23 }
   0xf   : > { %s34_s29 = sor.u32 %s33_s24, %s32_s28  ;;  %p527_p11 = scmp.ge.s32.totalorder %s753_s19, 4 }
  0x10   : > { %p35_p10 = scmp.eq.s32.totalorder %s34_s29, 0 }
  0x11   : > { %146 = sbr.rel (%p527_p11) target bundleno = 31 (0x1f), region = 24 }
  0x12   : > { %s851_s4 = scalar_select %p35_p10, %s733_s14, %s37_s30  }
  0x16   : > { %149 = sbr.rel (!%p831_p3) target bundleno = 31 (0x1f), region = 28  ;;  %s151_s5 = sand.u32 (%p831_p3), 1, %s733_s14  }
  0x17   : > { %s529_s6 = sshll.u32 (%p831_p3), %s745_s17, 1  ;;  %s528_s7 = sshll.u32 (%p831_p3), %s151_s5, 4 }
  0x18   : > { %s530_s8 = sshll.u32 (%p831_p3), %s749_s18, 3  ;;  %s153_s24 = scalar_lea.vmem (%p831_p3), [#allocation2], %s528_s7 }
  0x19   : > { %s156_s9 = sadd.s32 (%p831_p3), %s530_s8, %s529_s6 }
  0x1a   : > { %s531_s10 = sshll.u32 (%p831_p3), %s156_s9, 2 }
  0x1b   : > { %s158_s21 = scalar_lea.vmem %s968_s0, %s531_s10 }
  0x1c   : > { %v189_v0 = vld [vmem:[%s158_s21] sm:$0xff]  ;;  %v191_v1 = vld [vmem:[%s158_s21 + $0x10] sm:$0xff] }
  0x1d   : > { %190 = vst [vmem:[%s153_s24] sm:$0xff] %v189_v0 }
  0x1e   : > { %192 = vst [vmem:[%s153_s24 + $0x8] sm:$0xff] %v191_v1 }
  0x1f PF: > { %p532_p12 = scmp.ge.s32.totalorder %s753_s19, 1  ;;  %p197_p13 = scmp.lt.s32.totalorder %s753_s19, 5 }
  0x21   : > { %p198_p0 = pnand %p532_p12, %p197_p13 }
  0x22   : > { %s865_s25 = sand.u32 (!%p198_p0), 1, %s729_s13   ;;  %s569_s5 = sshll.u32 (!%p198_p0), %s741_s16, 5 }
  0x23   : > { %201 = sbr.rel (%p198_p0) target bundleno = 215 (0xd7), region = 66  ;;  %s533_s30 = sshll.u32 (!%p198_p0), %s865_s25, 4 }
  0x24   : > { %s206_s7 = scalar_lea.vmem (!%p198_p0), [#allocation2], %s533_s30  ;;  %s534_s28 = sshll.u32 (!%p198_p0), %s865_s25, 6 }
  0x25   : > { %s913_s29 = scalar_lea.vmem (!%p198_p0), [#allocation3], %s534_s28  ;;  %s568_s30 = sshll.u32 (!%p198_p0), %s737_s15, 1 }
  0x26   : > { %s433_s6 = sadd.s32 (!%p198_p0), %s569_s5, %s568_s30  ;;  %s436_s9 = sshll.u32 (!%p198_p0), %s913_s29, 4  ;;  %s437_s9 = int_to_ptr.vmem [resolvable:$true] %s436_s9 }
  0x27   : > { %s570_s15 = sshll.u32 (!%p198_p0), %s433_s6, 2  ;;  %s422_s11 = scalar_lea.sflag (!%p198_p0), [#allocation4], %s865_s25 }
  0x28   : > { %v242_v2 = vld [vmem:[%s970_s2 + $0x10] sm:$0xff]  ;;  %v755_v3 = vmov 0   ;;  %v240_v4 = vld [vmem:[%s970_s2] sm:$0xff]  ;;  %v578_v6 = vld [vmem:[%s206_s7 + $0x4] sm:$0xf0]  ;;  %vm318_vm0 = vcmask 130048   ;;  %s435_s8 = scalar_lea.hbm %s971_s3, %s570_s15 }
  0x29   : > { %657 = vset.pattern.permute.xlu1 %v755_v3  ;;  %656 = vset.pattern.permute.xlu0 %v755_v3  ;;  %v553_v5 = vld [vmem:[%s206_s7] sm:$0xf]  ;;  %v577_v8 = vld [vmem:[%s206_s7 + $0x4] sm:$0xf]  ;;  %v555_v9 = vld [vmem:[%s206_s7 + $0x8] sm:$0xf0] }
  0x2a   : > { %260 = vperm.xlu1 %657, %v242_v2   ;;  %250 = vperm.xlu0 %656, %v240_v4   ;;  %v554_v7 = vor.u32 %v578_v6, %v553_v5  ;;  %v558_v10 = vor.u32 %v577_v8, %v555_v9  ;;  %v573_v11 = vld [vmem:[%s969_s1] sm:$0xff]  ;;  %v575_v12 = vld [vmem:[%s969_s1 + $0x10] sm:$0xff]  ;;  %v243_v14 = vld [vmem:[%s970_s2 + $0x18] sm:$0xff]  ;;  %s438_s10 = sshll.u32 %s435_s8, 4  ;;  %s679_s30 = scalar_lea.hbm %s971_s3, 256  ;;  %s439_s10 = int_to_ptr.hbm [resolvable:$true] %s438_s10 }
  0x2b   : > { %658 = vset.pattern.permute.xlu2 %v755_v3  ;;  %v244_v13 = vld [vmem:[%s970_s2 + $0x20] sm:$0xff]  ;;  %v241_v15 = vld [vmem:[%s970_s2 + $0x8] sm:$0xff]  ;;  %v247_v17 = vld [vmem:[%s970_s2 + $0x38] sm:$0xff]  ;;  %s673_s20 = sshra.s32 %s439_s10, 4  ;;  %s674_s20 = int_to_ptr.hbm [resolvable:$true] %s673_s20 }
  0x2c   : > { %338 = vmatpush.bf16.msra.mxu0 %v554_v7  ;;  %579 = vmatpush.bf16.msra.mxu2 %v554_v7  ;;  %v245_v16 = vld [vmem:[%s970_s2 + $0x28] sm:$0xff]  ;;  %v246_v18 = vld [vmem:[%s970_s2 + $0x30] sm:$0xff]  ;;  %v576_v20 = vld [vmem:[%s969_s1 + $0x18] sm:$0xff]  ;;  %s675_s21 = scalar_lea.hbm %s674_s20, 64  ;;  %p680_p4 = scmp.lt.s32.totalorder %s674_s20, %s971_s3 }
  0x2d   : > { %367 = vmatpush.bf16.msra.mxu1 %v558_v10  ;;  %580 = vmatpush.bf16.msra.mxu3 %v558_v10  ;;  %v574_v19 = vld [vmem:[%s969_s1 + $0x8] sm:$0xff]  ;;  %p676_p1 = scmp.ne.s32.totalorder %s674_s20, %s675_s21  ;;  %p681_p5 = scmp.lt.s32.totalorder %s679_s30, %s675_s21 }
  0x2e   : > { %270 = vperm.xlu2 %658, %v244_v13  }
  0x2f   : > { %559 = vmatmul.msk.bf16.vlgmr.msra.gmra.mxu0 %vm318_vm0, %v573_v11  ;;  %561 = vmatmul.msk.bf16.vlgmr.msra.gmra.mxu2 %vm318_vm0, %v575_v12  ;;  %p677_p2 = pnand %p676_p1, %p839_p8  ;;  %p682_p6 = por %p681_p5, %p680_p4 }
  0x30   : > { %563 = vmatmul.msk.bf16.vlgmr.msra.gmra.mxu1 %vm318_vm0, %v573_v11  ;;  %565 = vmatmul.msk.bf16.vlgmr.msra.gmra.mxu3 %vm318_vm0, %v575_v12 }
  0x31   : > { %p678_p3 = pneg %p677_p2 }
  0x32   : > { %265 = vperm.xlu1 %657, %v243_v14   ;;  %255 = vperm.xlu0 %656, %v241_v15  }
  0x33   : > { %p683_p7 = pnand %p682_p6, %p678_p3 }
  0x36   : > { %275 = vperm.xlu2 %658, %v245_v16  }
  0x3a   : > { %285 = vperm.xlu1 %657, %v247_v17   ;;  %280 = vperm.xlu0 %656, %v246_v18  }
  0x3f   : > { %560 = vmatmul.msk.bf16.gmra.mxu0 %vm318_vm0, %v574_v19  ;;  %562 = vmatmul.msk.bf16.gmra.mxu2 %vm318_vm0, %v576_v20 }
  0x40   : > { %564 = vmatmul.msk.bf16.gmra.mxu1 %vm318_vm0, %v574_v19  ;;  %566 = vmatmul.msk.bf16.gmra.mxu3 %vm318_vm0, %v576_v20 }
  0x88   : > { %v271_v26 = vpop.permute.xlu2 %270 }
  0x90   : > { %v276_v45 = vpop.permute.xlu2 %275 }
  0x9c   : > { %v251_v21 = vpop.permute.xlu0 %250  ;;  %v261_v39 = vpop.permute.xlu1 %260 }
  0xa4   : > { %v256_v33 = vpop.permute.xlu0 %255  ;;  %v266_v58 = vpop.permute.xlu1 %265 }
  0xac   : > { %v340_v22 = vpop.f32.mrf.mxu0  ;;  %v281_v61 = vpop.permute.xlu0 %280 }
  0xad   : > { %v341_v23 = vadd.f32 %v340_v22, %v251_v21  ;;  %v369_v24 = vpop.f32.mrf.mxu1  ;;  %v286_v12 = vpop.permute.xlu1 %285 }
  0xae   : > { %v370_v25 = vadd.f32 %v369_v24, %v251_v21 }
  0xaf   : > { %v389_v27 = vmax.f32 %v341_v23, 0.0 }
  0xb0   : > { %v390_v28 = vmax.f32 %v370_v25, 0.0 }
  0xb2   : > { %v405_v29 = vpack.c.bf16 %v390_v28, %v389_v27  ;;  %v350_v30 = vpop.f32.mrf.mxu2 }
  0xb3   : > { %v351_v31 = vadd.f32 %v350_v30, %v271_v26  ;;  %v379_v32 = vpop.f32.mrf.mxu3 }
  0xb4   : > { %413 = vst [vmem:[%s913_s29] sm:$0xff] %v405_v29  ;;  %v380_v34 = vadd.f32 %v379_v32, %v271_v26  ;;  %v342_v35 = vpop.f32.mrf.mxu0 }
  0xb5   : > { %v397_v36 = vmax.f32 %v351_v31, 0.0  ;;  %v343_v37 = vadd.f32 %v342_v35, %v256_v33  ;;  %v371_v38 = vpop.f32.mrf.mxu1 }
  0xb6   : > { %v398_v40 = vmax.f32 %v380_v34, 0.0  ;;  %v372_v41 = vadd.f32 %v371_v38, %v256_v33 }
  0xb7   : > { %v391_v42 = vmax.f32 %v343_v37, 0.0 }
  0xb8   : > { %v409_v43 = vpack.c.bf16 %v398_v40, %v397_v36  ;;  %v392_v44 = vmax.f32 %v372_v41, 0.0 }
  0xba   : > { %417 = vst [vmem:[%s913_s29 + $0x20] sm:$0xff] %v409_v43  ;;  %v406_v46 = vpack.c.bf16 %v392_v44, %v391_v42  ;;  %v352_v47 = vpop.f32.mrf.mxu2 }
  0xbb   : > { %v353_v48 = vadd.f32 %v352_v47, %v276_v45  ;;  %v381_v49 = vpop.f32.mrf.mxu3 }
  0xbc   : > { %414 = vst [vmem:[%s913_s29 + $0x8] sm:$0xff] %v406_v46  ;;  %v382_v50 = vadd.f32 %v381_v49, %v276_v45  ;;  %v345_v51 = vpop.f32.mrf.mxu0 }
  0xbd   : > { %v399_v52 = vmax.f32 %v353_v48, 0.0  ;;  %v346_v53 = vadd.f32 %v345_v51, %v261_v39  ;;  %v374_v54 = vpop.f32.mrf.mxu1 }
  0xbe   : > { %v400_v55 = vmax.f32 %v382_v50, 0.0  ;;  %v375_v56 = vadd.f32 %v374_v54, %v261_v39 }
  0xbf   : > { %v393_v57 = vmax.f32 %v346_v53, 0.0 }
  0xc0   : > { %v410_v59 = vpack.c.bf16 %v400_v55, %v399_v52  ;;  %v394_v60 = vmax.f32 %v375_v56, 0.0 }
  0xc2   : > { %418 = vst [vmem:[%s913_s29 + $0x28] sm:$0xff] %v410_v59  ;;  %v407_v62 = vpack.c.bf16 %v394_v60, %v393_v57  ;;  %v355_v63 = vpop.f32.mrf.mxu2 }
  0xc3   : > { %v356_v0 = vadd.f32 %v355_v63, %v281_v61  ;;  %v384_v1 = vpop.f32.mrf.mxu3 }
  0xc4   : > { %415 = vst [vmem:[%s913_s29 + $0x10] sm:$0xff] %v407_v62  ;;  %v385_v2 = vadd.f32 %v384_v1, %v281_v61  ;;  %v347_v3 = vpop.f32.mrf.mxu0 }
  0xc5   : > { %v401_v4 = vmax.f32 %v356_v0, 0.0  ;;  %v348_v5 = vadd.f32 %v347_v3, %v266_v58  ;;  %v376_v6 = vpop.f32.mrf.mxu1 }
  0xc6   : > { %v402_v7 = vmax.f32 %v385_v2, 0.0  ;;  %v377_v8 = vadd.f32 %v376_v6, %v266_v58 }
  0xc7   : > { %v395_v9 = vmax.f32 %v348_v5, 0.0 }
  0xc8   : > { %v411_v10 = vpack.c.bf16 %v402_v7, %v401_v4  ;;  %v396_v11 = vmax.f32 %v377_v8, 0.0 }
  0xca   : > { %419 = vst [vmem:[%s913_s29 + $0x30] sm:$0xff] %v411_v10  ;;  %v408_v13 = vpack.c.bf16 %v396_v11, %v395_v9  ;;  %v357_v14 = vpop.f32.mrf.mxu2 }
  0xcb   : > { %v358_v15 = vadd.f32 %v357_v14, %v286_v12  ;;  %v386_v16 = vpop.f32.mrf.mxu3 }
  0xcc   : > { %416 = vst [vmem:[%s913_s29 + $0x18] sm:$0xff] %v408_v13  ;;  %v387_v17 = vadd.f32 %v386_v16, %v286_v12 }
  0xcd   : > { %v403_v18 = vmax.f32 %v358_v15, 0.0 }
  0xce   : > { %v404_v19 = vmax.f32 %v387_v17, 0.0 }
  0xd0   : > { %v412_v20 = vpack.c.bf16 %v404_v19, %v403_v18 }
  0xd2   : > { %420 = vst [vmem:[%s913_s29 + $0x38] sm:$0xff] %v412_v20 }
  0xd3   : > { %686 = shalt.err (!%p683_p7)
}
  0xd4   : > { %s756_s25 = smov 128   ;;  %s757_s29 = smov 256  }
  0xd5   : > { %s758_s15 = smov 8  }
  0xd6   : > { %581 = dma.vmem_to_hbm [thread:$0]  (%p839_p8), %s437_s9, 1024, %s439_s10, %s422_s11, %s756_s25, %s757_s29, %s758_s15  }
  0xd7 PF: > { %p587_p10 = scmp.ge.s32.totalorder %s753_s19, 2  ;;  %s453_s16 = sand.u32 1, %s725_s12  }
  0xd8   : > { %s454_s7 = scalar_lea.sflag [#allocation4], %s453_s16 }
  0xd9   : > { %p584_p11 = pnand %p587_p10, %p843_p9 }
  0xdb   : > { %p585_p12 = pneg %p584_p11 }
  0xdd   : > { %720 = dma.done.wait (%p585_p12), %s454_s7, 1024  }
  0xde   : > { %722 = vsyncadd (%p585_p12), %s454_s7, 4294966272  ;;  %s16_s19 = sadd.s32 1, %s753_s19   ;;  %s975_s12 = smov %s729_s13 }
  0xdf   : > { %p13_p13 = scmp.ge.s32.totalorder %s16_s19, 6   ;;  %s976_s13 = smov %s733_s14 }
  0xe0   : > { %s977_s14 = smov %s851_s4  ;;  %s978_s15 = smov %s745_s17 }
  0xe1   : > { %s979_s16 = smov %s749_s18  ;;  %s980_s17 = smov %s983_s22 }
  0xe2   : > { %s981_s18 = smov %s987_s23  ;;  %15 = sbr.rel (!%p13_p13) target bundleno = 5 (0x5), region = 110 }
  0xe7   :  { %460 = vsyncpa [#allocation4], 1 }
  0xe8   :  { %462 = vsyncpa [#allocation4 + $0x1], 1 }

</bundles_post_ra>
